<compile_context>
chip_gen: v5e
topology: v5e:2x2
jax: 0.10.0
libtpu: 0.0.40
codegen_flags: <defaults>
</compile_context>

<pallas_src>
import jax
import jax.numpy as jnp
from jax.experimental import pallas as pl
from jax.experimental.pallas import tpu as pltpu

NUM_CLASSES = 10
LANE = 128
# Soft per-x-block byte budget (double-buffered by the pipeline => ~2x this).
_X_BLOCK_BYTE_BUDGET = 3 * 1024 * 1024


def _round_up(x, m):
    return ((x + m - 1) // m) * m


def _choose_tiles(n, c, hw, itemsize):
    """Pick (batch tile, spatial tile); spatial tile is a lane-dense multiple of 128."""
    # Batch tile: keep even a minimum-size (128-lane) spatial chunk within budget.
    tn_cap = max(1, _X_BLOCK_BYTE_BUDGET // (c * LANE * itemsize))
    tn_cap = min(tn_cap, 256)
    if n >= 16:
        # Ensure >= 2 batch tiles so the "parallel" axis shards across v7x's 2 TCs.
        tn_cap = min(tn_cap, max(8, ((n // 2) // 8) * 8))
    tn = min(tn_cap, n)
    if tn < n:
        # Tiled batch axis => output-block sublane dim must be a multiple of 8.
        # (The 8-row floor may exceed the soft budget for very large C; the
        # explicit vmem_limit below is computed from the ACTUAL block sizes.)
        tn = max(8, (tn // 8) * 8)
    # Spatial tile: multiple of 128 filling the remaining budget.
    ts = max(LANE, (_X_BLOCK_BYTE_BUDGET // (tn * c * itemsize)) // LANE * LANE)
    ts = min(ts, _round_up(hw, LANE))
    return tn, ts


def _vmem_limit_bytes(tn, c, ts, kpad, x_itemsize):
    """Explicit scoped-VMEM request from actual (tile-padded) block sizes + headroom."""
    sub = max(8, 32 // x_itemsize)                     # sublane packing for x dtype
    x_blk = tn * _round_up(c, sub) * ts * x_itemsize   # double-buffered input block
    w_b = _round_up(c, 8) * kpad * 4
    b_b = 8 * kpad * 4
    o_blk = _round_up(tn, 8) * kpad * 4
    acc_b = _round_up(tn, 8) * _round_up(c, LANE) * 4
    need = 2 * x_blk + 2 * o_blk + 2 * w_b + 2 * b_b + acc_b
    return int(need * 1.5) + (4 << 20)                 # headroom for compiler scratch


def _endblock_kernel(x_ref, w_ref, b_ref, o_ref, acc_ref):
    # x_ref: (TN, C, TS)   spatial on lanes (NCHW-native, no wrapper transpose)
    # w_ref: (C, KPAD) f32, pre-scaled by 1/HW    b_ref: (1, KPAD) f32
    # o_ref: (TN, KPAD) f32 (lane-dense store)
    # acc_ref: (TN, C) f32 pooled-sum accumulator, resident across the spatial axis
    k = pl.program_id(1)

    @pl.when(k == 0)
    def _():
        acc_ref[...] = jnp.zeros_like(acc_ref)

    # Lane (spatial) partial sum with f32 accumulation; zero padding adds 0.
    acc_ref[...] += jnp.sum(x_ref[...], axis=2, dtype=jnp.float32)

    @pl.when(k == pl.num_programs(1) - 1)
    def _():
        # Single MXU dot + bias add + store; 1/HW already folded into w_ref.
        # For bit-level parity with a PyTorch f32 Linear at large C, pass
        # precision=jax.lax.Precision.HIGHEST here (kept at default: the
        # contraction is tiny and the reference below uses the same default).
        out = jnp.dot(acc_ref[...], w_ref[...], preferred_element_type=jnp.float32)
        o_ref[...] = (out + b_ref[...]).astype(o_ref.dtype)


def prepare_fc_params(w_fc, b_fc, hw):
    """One-time prep: PyTorch (out=10, in=C) weight -> lane-padded (C, 128) f32 W^T
    with the 1/HW mean scale folded in, and (10,) bias -> (1, 128) f32."""
    out_f, c = w_fc.shape
    kpad = _round_up(max(out_f, 1), LANE)
    w_scaled = (w_fc.astype(jnp.float32) / float(hw)).T          # (C, out_f)
    w_pad = jnp.zeros((c, kpad), jnp.float32).at[:, :out_f].set(w_scaled)
    b_pad = jnp.zeros((1, kpad), jnp.float32).at[0, :out_f].set(b_fc.astype(jnp.float32))
    return w_pad, b_pad


def endblock_forward(x_nchw, w_pad, b_pad, num_classes=NUM_CLASSES):
    """EndBlock forward for an NCHW activation (matches the PyTorch module)."""
    n, c, h, w = x_nchw.shape
    hw = h * w
    c_w, kpad = w_pad.shape
    assert c_w == c and kpad % LANE == 0

    x3 = x_nchw.reshape(n, c, hw)          # free, contiguous reshape — no transpose
    itemsize = jnp.dtype(x3.dtype).itemsize

    tn, ts = _choose_tiles(n, c, hw, itemsize)
    n_pad = _round_up(n, tn)
    hw_pad = _round_up(hw, ts)
    if (n_pad, hw_pad) != (n, hw):
        # Zero padding contributes 0 to the pooled sum and the true 1/HW is
        # already folded into w_pad, so numerics are unchanged for any shape.
        x3 = jnp.pad(x3, ((0, n_pad - n), (0, 0), (0, hw_pad - hw)))

    grid = (n_pad // tn, hw_pad // ts)

    out_pad = pl.pallas_call(
        _endblock_kernel,
        out_shape=jax.ShapeDtypeStruct((n_pad, kpad), jnp.float32),
        grid_spec=pltpu.PrefetchScalarGridSpec(
            num_scalar_prefetch=0,
            grid=grid,
            in_specs=[
                pl.BlockSpec((tn, c, ts), lambda i, k: (i, 0, k)),
                pl.BlockSpec((c, kpad), lambda i, k: (0, 0)),
                pl.BlockSpec((1, kpad), lambda i, k: (0, 0)),
            ],
            out_specs=pl.BlockSpec((tn, kpad), lambda i, k: (i, 0)),
            scratch_shapes=[pltpu.VMEM((tn, c), jnp.float32)],
        ),
        compiler_params=pltpu.CompilerParams(
            dimension_semantics=("parallel", "arbitrary"),
            vmem_limit_bytes=_vmem_limit_bytes(tn, c, ts, kpad, itemsize),
        ),
        cost_estimate=pl.CostEstimate(
            flops=n * hw * c + 2 * n * c * kpad,
            transcendentals=0,
            bytes_accessed=(n_pad * c * hw_pad * itemsize
                            + c * kpad * 4 + kpad * 4
                            + n_pad * kpad * 4),
        ),
    )(x3, w_pad, b_pad)

    return out_pad[:n, :num_classes]


if __name__ == "__main__":
    # Deterministic synthetic setup (no checkpoint load).
    N, C, H, W = 2, 4, 16, 16

    key = jax.random.PRNGKey(0)
    kx, kw, kb = jax.random.split(key, 3)

    x = jax.random.normal(kx, (N, C, H, W), dtype=jnp.float32)

    # nn.Linear(in_planes, 10) default init: U(-1/sqrt(C), 1/sqrt(C)); PyTorch stores (out, in).
    bound = 1.0 / float(C) ** 0.5
    w_fc = jax.random.uniform(kw, (NUM_CLASSES, C), minval=-bound, maxval=bound,
                              dtype=jnp.float32)
    b_fc = jax.random.uniform(kb, (NUM_CLASSES,), minval=-bound, maxval=bound,
                              dtype=jnp.float32)

    # Hoisted, one-time parameter prep (1/HW folded in, f32, lane-padded).
    w_pad, b_pad = prepare_fc_params(w_fc, b_fc, H * W)

    out = endblock_forward(x, w_pad, b_pad)
    out = jax.block_until_ready(out)

    # Pure-JAX reference check (global average pool + Linear).
    ref = jnp.mean(x, axis=(2, 3)) @ w_fc.T + b_fc
    assert out.shape == (N, NUM_CLASSES)
    assert out.dtype == jnp.float32
    assert jnp.allclose(out, ref, atol=1e-5, rtol=1e-5)

    print("KERNEL_OK")
</pallas_src>

<mosaic_0001>
module attributes {stable_mosaic.version = 11 : i64} {
  func.func @_endblock_kernel(%arg0: i32, %arg1: i32, %arg2: memref<2x4x256xf32, #tpu.memory_space<vmem>>, %arg3: memref<4x128xf32, #tpu.memory_space<vmem>>, %arg4: memref<1x128xf32, #tpu.memory_space<vmem>>, %arg5: memref<2x128xf32, #tpu.memory_space<vmem>>, %arg6: memref<2x4xf32, #tpu.memory_space<vmem>>) attributes {dimension_semantics = [#tpu.dimension_semantics<parallel>, #tpu.dimension_semantics<arbitrary>], iteration_bounds = array<i64: 1, 1>, scalar_prefetch = 0 : i64, scratch_operands = 1 : i64, tpu.core_type = #tpu.core_type<tc>, window_params = [{transform_indices = @transform_0, window_bounds = array<i64: 2, 4, 256>}, {pipeline_mode = #tpu.pipeline_mode<synchronous>, transform_indices = @transform_1, window_bounds = array<i64: 4, 128>}, {pipeline_mode = #tpu.pipeline_mode<synchronous>, transform_indices = @transform_2, window_bounds = array<i64: 1, 128>}, {transform_indices = @transform_3, window_bounds = array<i64: 2, 128>}]} {
    %c0_i32 = arith.constant 0 : i32
    %0 = arith.cmpi eq, %arg1, %c0_i32 : i32
    %1 = arith.extui %0 : i1 to i32
    %c0_i32_0 = arith.constant 0 : i32
    %2 = arith.cmpi ne, %1, %c0_i32_0 : i32
    scf.if %2 {
      %cst_9 = arith.constant 0.000000e+00 : f32
      %11 = vector.broadcast %cst_9 : f32 to vector<2x4xf32>
      %c0_10 = arith.constant 0 : index
      %c0_11 = arith.constant 0 : index
      %12 = vector.load %arg6[%c0_10, %c0_11] : memref<2x4xf32, #tpu.memory_space<vmem>>, vector<2x4xf32>
      tpu.vector_store %arg6[%c0_10, %c0_11], %11 {strides = array<i32>} : memref<2x4xf32, #tpu.memory_space<vmem>>, vector<2x4xf32>,
    } else {
    }
    %c0 = arith.constant 0 : index
    %c0_1 = arith.constant 0 : index
    %3 = vector.load %arg6[%c0, %c0_1] : memref<2x4xf32, #tpu.memory_space<vmem>>, vector<2x4xf32>
    %c0_2 = arith.constant 0 : index
    %c0_3 = arith.constant 0 : index
    %c0_4 = arith.constant 0 : index
    %4 = vector.load %arg2[%c0_2, %c0_3, %c0_4] : memref<2x4x256xf32, #tpu.memory_space<vmem>>, vector<2x4x256xf32>
    %cst = arith.constant dense<0.000000e+00> : vector<2x4xf32>
    %5 = vector.multi_reduction <add>, %4, %cst [2] : vector<2x4x256xf32> to vector<2x4xf32>
    %6 = arith.addf %3, %5 : vector<2x4xf32>
    %c0_5 = arith.constant 0 : index
    %c0_6 = arith.constant 0 : index
    %7 = vector.load %arg6[%c0_5, %c0_6] : memref<2x4xf32, #tpu.memory_space<vmem>>, vector<2x4xf32>
    tpu.vector_store %arg6[%c0_5, %c0_6], %6 {strides = array<i32>} : memref<2x4xf32, #tpu.memory_space<vmem>>, vector<2x4xf32>,
    %c0_i32_7 = arith.constant 0 : i32
    %8 = arith.cmpi eq, %arg1, %c0_i32_7 : i32
    %9 = arith.extui %8 : i1 to i32
    %c0_i32_8 = arith.constant 0 : i32
    %10 = arith.cmpi ne, %9, %c0_i32_8 : i32
    scf.if %10 {
      %c0_9 = arith.constant 0 : index
      %c0_10 = arith.constant 0 : index
      %11 = vector.load %arg6[%c0_9, %c0_10] : memref<2x4xf32, #tpu.memory_space<vmem>>, vector<2x4xf32>
      %c0_11 = arith.constant 0 : index
      %c0_12 = arith.constant 0 : index
      %12 = vector.load %arg3[%c0_11, %c0_12] : memref<4x128xf32, #tpu.memory_space<vmem>>, vector<4x128xf32>
      %cst_13 = arith.constant dense<0.000000e+00> : vector<2x128xf32>
      %13 = tpu.matmul %11, %12, %cst_13 {dimension_numbers = #tpu.dot_dimension_numbers<[1], [0], [0], [1], [0, 0, 1, 1], [], []>} : vector<2x4xf32>, vector<4x128xf32>, vector<2x128xf32> -> vector<2x128xf32>
      %c0_14 = arith.constant 0 : index
      %c0_15 = arith.constant 0 : index
      %14 = vector.load %arg4[%c0_14, %c0_15] : memref<1x128xf32, #tpu.memory_space<vmem>>, vector<1x128xf32>
      %15 = vector.broadcast %14 : vector<1x128xf32> to vector<2x128xf32>
      %16 = arith.addf %13, %15 : vector<2x128xf32>
      %c0_16 = arith.constant 0 : index
      %c0_17 = arith.constant 0 : index
      %17 = vector.load %arg5[%c0_16, %c0_17] : memref<2x128xf32, #tpu.memory_space<vmem>>, vector<2x128xf32>
      tpu.vector_store %arg5[%c0_16, %c0_17], %16 {strides = array<i32>} : memref<2x128xf32, #tpu.memory_space<vmem>>, vector<2x128xf32>,
    } else {
    }
    return
  }
  func.func @transform_0(%arg0: i32, %arg1: i32) -> (i32, i32, i32) {
    %c0_i32 = arith.constant 0 : i32
    %c0_i32_0 = arith.constant 0 : i32
    return %arg0, %c0_i32, %arg1 : i32, i32, i32
  }
  func.func @transform_1(%arg0: i32, %arg1: i32) -> (i32, i32) {
    %c0_i32 = arith.constant 0 : i32
    %c0_i32_0 = arith.constant 0 : i32
    %c0_i32_1 = arith.constant 0 : i32
    return %c0_i32, %c0_i32_0 : i32, i32
  }
  func.func @transform_2(%arg0: i32, %arg1: i32) -> (i32, i32) {
    %c0_i32 = arith.constant 0 : i32
    %c0_i32_0 = arith.constant 0 : i32
    %c0_i32_1 = arith.constant 0 : i32
    return %c0_i32, %c0_i32_0 : i32, i32
  }
  func.func @transform_3(%arg0: i32, %arg1: i32) -> (i32, i32) {
    %c0_i32 = arith.constant 0 : i32
    %c0_i32_0 = arith.constant 0 : i32
    return %arg0, %c0_i32 : i32, i32
  }
}

</mosaic_0001>

<bundles_post_ra>
// kernel: tpu_custom_call.1
= control target key start
LH: loop header
LB: loop body
LE: loop exit
PB: predicated region body
PF: predicated region fallthrough
CT: control target
= control target key end

     0   :  { %8 = vsyncpa [#allocation4], 0  ;;  %s275_s0 = inlined_call_operand.hbm [shape: f32[2,4,256], index: 0, kind: input, shape index: {}]   ;;  %s276_s1 = inlined_call_operand.hbm [shape: f32[4,128], index: 1, kind: input, shape index: {}]   ;;  %s277_s2 = inlined_call_operand.vmem [shape: f32[1,128], index: 2, kind: input, shape index: {}]   ;;  %s278_s3 = inlined_call_operand.hbm [shape: f32[2,128], index: 3, kind: output, shape index: {}]  }
   0x1   :  { %9 = vsyncpa [#allocation7], 0 }
   0x2   :  { %10 = vsyncpa [#allocation5], 0  ;;  %s15_s14 = sshll.u32 %s275_s0, 4  ;;  %s232_s15 = smov [#allocation3]   ;;  %s16_s14 = int_to_ptr.hbm [resolvable:$true] %s15_s14 }
   0x3   :  { %s17_s16 = sshll.u32 %s232_s15, 4  ;;  %s29_s19 = sshll.u32 %s276_s1, 4  ;;  %s18_s16 = int_to_ptr.vmem [resolvable:$true] %s17_s16  ;;  %s30_s19 = int_to_ptr.hbm [resolvable:$true] %s29_s19 }
   0x4   :  { %s233_s20 = smov 128   ;;  %s234_s21 = smov 8  }
   0x5   :  { %23 = dma.hbm_to_vmem [thread:$0]  %s16_s14, 256, %s18_s16, [#allocation4], %s233_s20, %s233_s20, %s234_s21  }
   0x6   :  { %s235_s22 = smov [#allocation6]  }
   0x7   :  { %s31_s23 = sshll.u32 %s235_s22, 4  ;;  %s32_s23 = int_to_ptr.vmem [resolvable:$true] %s31_s23 }
   0x8   :  { %34 = dma.hbm_to_vmem [thread:$0]  %s30_s19, 64, %s32_s23, [#allocation7]  }
   0x9   :  { %226 = dma.done.wait [#allocation4], 256  }
   0xa   :  { %227 = vsyncadd [#allocation4], 4294967040 }
   0xb   :  { %228 = dma.done.wait [#allocation7], 64  }
   0xc   :  { %229 = vsyncadd [#allocation7], 4294967232  ;;  %v52_v0 = vld [vmem:[#allocation3] sm:$0xff]  ;;  %v53_v1 = vld [vmem:[#allocation3 + $0x8] sm:$0xff]  ;;  %vm67_vm0 = vcmask 1043456   ;;  %vm49_vm1 = vcmask 25600   ;;  %v80_v15 = vlaneseq }
   0xd   :  { %56 = vst [vmem:[#allocation1] ss:$2 sm:$0xff] %v52_v0  ;;  %v236_v12 = vmov 0.0   ;;  %v94_v13 = vld [vmem:[#allocation6] sm:$0xf]  ;;  %vm84_vm2 = vcmask 1041409  }
   0xe   :  { %60 = vst [vmem:[#allocation1 + $0x10] ss:$2 sm:$0xff] %v53_v1  ;;  %145 = vmatpush.msk.msra.mxu0 %vm67_vm0, %v94_v13  ;;  %v81_v16 = vand.u32 127, %v80_v15  ;;  %vm99_vm3 = vcmask 31744   ;;  %v153_v24 = vld [vmem:[%s277_s2] ss:$0 sm:$0xff] }
   0xf   :  { %50 = vst.msk [vmem:[#allocation2] sm:$0x3] %vm49_vm1, %v236_v12  ;;  %s237_s24 = smov [#allocation8]   ;;  %s134_s28 = sshll.u32 %s278_s3, 4  ;;  %s135_s28 = int_to_ptr.hbm [resolvable:$true] %s134_s28 }
  0x10   :  { %s132_s25 = sshll.u32 %s237_s24, 4  ;;  %s133_s25 = int_to_ptr.vmem [resolvable:$true] %s132_s25 }
  0x14   :  { %v57_v2 = vld.sshfl [vmem:[#allocation1] sm:$0xff pattern:$0x75316420]  ;;  %v58_v3 = vld.sshfl [vmem:[#allocation1 + $0x8] sm:$0xff pattern:$0x75316420] }
  0x15   :  { %v68_v4 = vsel %vm67_vm0, %v57_v2, 0.0  ;;  %v69_v5 = vsel %vm67_vm0, %v58_v3, 0.0  ;;  %v61_v7 = vld.sshfl [vmem:[#allocation1 + $0x10] sm:$0xff pattern:$0x75316420] }
  0x16   :  { %v70_v6 = vadd.f32 %v69_v5, %v68_v4  ;;  %v62_v8 = vld.sshfl [vmem:[#allocation1 + $0x18] sm:$0xff pattern:$0x75316420]  ;;  %v73_v9 = vsel %vm67_vm0, %v61_v7, 0.0  ;;  %v51_v19 = vld [vmem:[#allocation2] sm:$0x3] }
  0x17   :  { %v74_v10 = vsel %vm67_vm0, %v62_v8, 0.0 }
  0x18   :  { %71 = vadd.xlane.f32.xlu0 %v70_v6  ;;  %v75_v11 = vadd.f32 %v74_v10, %v73_v9 }
  0x20   :  { %76 = vadd.xlane.f32.xlu0 %v75_v11 }
  0x8b   :  { %v72_v14 = vpop.xlane.xlu0 %71 }
  0x8c   :  { %v82_v18 = vperm.slane %v72_v14, %v81_v16 }
  0x93   :  { %v77_v17 = vpop.xlane.xlu0 %76 }
  0x94   :  { %v83_v20 = vperm.slane %v77_v17, %v81_v16 }
  0x96   :  { %v85_v21 = vsel %vm84_vm2, %v83_v20, %v82_v18 }
  0x97   :  { %v87_v22 = vadd.f32 %v85_v21, %v51_v19 }
  0x99   :  { %89 = vst.msk [vmem:[#allocation2] sm:$0x3] %vm49_vm1, %v87_v22 }
  0xa0   :  { %v93_v23 = vld [vmem:[#allocation2] sm:$0x3] }
  0xa1   :  { %146 = vmatmul.msk.f32.vlgmr.msra.gmra.mxu0 %vm99_vm3, %v93_v23 }
 0x11e   :  { %v123_v25 = vpop.f32.mrf.mxu0 }
 0x11f   :  { %v124_v26 = vadd.f32 %v153_v24, %v123_v25 }
 0x121   :  { %126 = vst [vmem:[#allocation8] sm:$0x3] %v124_v26 }
 0x122   :  { %137 = dma.vmem_to_hbm [thread:$0]  %s133_s25, 32, %s135_s28, [#allocation5]  }
 0x123   :  { %230 = dma.done.wait [#allocation5], 32  }
 0x124   :  { %231 = vsyncadd [#allocation5], 4294967264 }
 0x125   :  { %142 = vsyncpa [#allocation4], 1 }
 0x126   :  { %143 = vsyncpa [#allocation7], 1 }
 0x127   :  { %144 = vsyncpa [#allocation5], 1 }

</bundles_post_ra>
